<compile_context>
chip_gen: v7x
topology: tpu7x:2x2x1
jax: 0.10.0
libtpu: 0.0.40
codegen_flags: <defaults>
</compile_context>

<pallas_src>
import functools

import jax
import jax.numpy as jnp
from jax.experimental import pallas as pl
from jax.experimental.pallas import tpu as pltpu


def _round_up(x, m):
    return ((x + m - 1) // m) * m


def _ipd_kernel_streamed(a_ref, bt_ref, o_ref, *, sigmoid):
    # a_ref: (tm, Dp) rows of z.  bt_ref: (Dp, tn) columns of z^T (j-block).
    out = jax.lax.dot_general(
        a_ref[...], bt_ref[...],
        dimension_numbers=(((1,), (0,)), ((), ())),
        preferred_element_type=jnp.float32,
    )
    if sigmoid:
        out = jax.nn.sigmoid(out)            # f32 sigmoid on the accumulator
    o_ref[...] = out.astype(o_ref.dtype)     # down-cast only at the store


def _ipd_kernel_resident(a_ref, zt_ref, o_ref, *, sigmoid, tn):
    # zt_ref holds ALL of z^T (Dp, Nc) resident in VMEM (fetched once, since
    # its block index is constant).  Slice the j-th column block locally.
    col0 = pl.multiple_of(pl.program_id(1) * tn, 128)
    b = zt_ref[:, pl.ds(col0, tn)]
    out = jax.lax.dot_general(
        a_ref[...], b,
        dimension_numbers=(((1,), (0,)), ((), ())),
        preferred_element_type=jnp.float32,
    )
    if sigmoid:
        out = jax.nn.sigmoid(out)
    o_ref[...] = out.astype(o_ref.dtype)


def inner_product_decoder(z, sigmoid=True, *, tm=512, tn=2048,
                          compute_in_bf16=True, out_dtype=None,
                          resident_budget_bytes=16 * 2**20):
    """adj = sigmoid(z @ z.T) (or raw z @ z.T) via a tiled Pallas matmul.

    out_dtype=None defaults to bfloat16 for the sigmoid path (probabilities in
    [0, 1] keep ~3 digits; halves the store-bound HBM traffic) and to z.dtype
    for the logits path.  Pass jnp.float32 for exact outputs.
    """
    N, D = z.shape

    if out_dtype is None:
        out_dtype = jnp.bfloat16 if (sigmoid and z.dtype == jnp.float32) else z.dtype
    out_dtype = jnp.dtype(out_dtype)

    # bf16 operands feed the MXU natively on v6e/v7x (f32 accumulation keeps
    # the contraction exact-ish); set compute_in_bf16=False for f32 operands.
    work_dtype = (jnp.dtype(jnp.bfloat16)
                  if (compute_in_bf16 and z.dtype == jnp.float32)
                  else jnp.dtype(z.dtype))
    in_it = work_dtype.itemsize
    out_it = out_dtype.itemsize

    # Feature dim as one zero-padded 128-lane block (exact for z @ z.T).
    Dp = _round_up(max(D, 1), 128)

    # Tile sizes: clamp to the problem, keep (8, 128) alignment.  Small
    # problems collapse to a single tile; awkward N is handled by Pallas edge
    # clipping (no row padding, no post-kernel slice).
    tm = _round_up(min(tm, _round_up(N, 8)), 8)
    tn = _round_up(min(tn, _round_up(N, 128)), 128)
    grid = (pl.cdiv(N, tm), pl.cdiv(N, tn))

    # i-operand: rows of z, streamed tm rows per i-block (its block index does
    # not depend on j, so each row block is DMA'd only once).
    if Dp == D and work_dtype == z.dtype:
        za = z
    else:
        za = jnp.zeros((N, Dp), work_dtype).at[:, :D].set(z.astype(work_dtype))

    # j-operand: pre-transposed z (standard (m,k)x(k,n) contraction, no
    # per-tile XLU transpose).  Held fully resident in VMEM when it fits the
    # budget (kills the grid_i-fold re-reads); columns are zero-padded to a
    # multiple of tn so the in-kernel dynamic slice stays in bounds.
    nc_resident = _round_up(N, tn)
    resident = (2 * Dp * nc_resident * in_it) <= resident_budget_bytes
    if resident:
        Nc = nc_resident
        kernel = functools.partial(_ipd_kernel_resident, sigmoid=sigmoid, tn=tn)
        b_spec = pl.BlockSpec((Dp, Nc), lambda i, j: (0, 0))
        b_cols_vmem = Nc
    else:
        Nc = N
        kernel = functools.partial(_ipd_kernel_streamed, sigmoid=sigmoid)
        b_spec = pl.BlockSpec((Dp, tn), lambda i, j: (0, j))
        b_cols_vmem = tn
    zbt = jnp.zeros((Dp, Nc), work_dtype).at[:D, :N].set(z.T.astype(work_dtype))

    # VMEM footprint (double-buffered blocks) -> explicit scoped limit so big
    # f32 tiles never trip the default, but stay under v7x's 64 MiB physical.
    vmem_bytes = (2 * tm * tn * max(out_it, 4)     # output block (+f32 acc headroom)
                  + 2 * tm * Dp * in_it            # i-operand block
                  + 2 * Dp * b_cols_vmem * in_it)  # j-operand (resident or streamed)
    vmem_limit = int(min(64 * 2**20, max(32 * 2**20, 2 * vmem_bytes)))

    cost = pl.CostEstimate(
        flops=2 * N * N * Dp,
        transcendentals=N * N if sigmoid else 0,
        bytes_accessed=N * N * out_it + (N * Dp + Dp * Nc) * in_it,
    )

    return pl.pallas_call(
        kernel,
        out_shape=jax.ShapeDtypeStruct((N, N), out_dtype),
        grid=grid,
        in_specs=[
            pl.BlockSpec((tm, Dp), lambda i, j: (i, 0)),
            b_spec,
        ],
        out_specs=pl.BlockSpec((tm, tn), lambda i, j: (i, j)),
        compiler_params=pltpu.CompilerParams(
            dimension_semantics=("parallel", "parallel"),
            vmem_limit_bytes=vmem_limit,
        ),
        cost_estimate=cost,
    )(za, zbt)


if __name__ == "__main__":
    key = jax.random.PRNGKey(0)

    # Small latent matrix: 8 nodes, 32-dim latent code.
    N, D = 8, 32
    z = jax.random.normal(key, (N, D), dtype=jnp.float32)
    ref_sig = jax.nn.sigmoid(z @ z.T)
    ref_lin = z @ z.T

    # Exact path: f32 operands + f32 output, tight tolerance.
    adj_f32 = inner_product_decoder(z, sigmoid=True, compute_in_bf16=False,
                                    out_dtype=jnp.float32)
    jax.block_until_ready(adj_f32)
    assert adj_f32.shape == (N, N) and adj_f32.dtype == jnp.float32
    assert jnp.allclose(adj_f32, ref_sig, atol=1e-5, rtol=1e-5)

    # Logits path (sigmoid=False) keeps z.dtype output by default.
    logits = inner_product_decoder(z, sigmoid=False, compute_in_bf16=False)
    jax.block_until_ready(logits)
    assert logits.dtype == jnp.float32
    assert jnp.allclose(logits, ref_lin, atol=1e-4, rtol=1e-4)

    # Default fast path: bf16 operands + bf16 probability output.
    adj = inner_product_decoder(z, sigmoid=True)
    jax.block_until_ready(adj)
    assert adj.shape == (N, N) and adj.dtype == jnp.bfloat16
    assert jnp.allclose(adj.astype(jnp.float32), ref_sig, atol=5e-2, rtol=5e-2)

    # Awkward N (not a multiple of 8/128): exercises partial edge blocks (no
    # post-kernel slice) and the streamed (non-resident) j-operand path.
    N2, D2 = 300, 16
    z2 = jax.random.normal(jax.random.PRNGKey(1), (N2, D2), dtype=jnp.float32)
    ref2 = jax.nn.sigmoid(z2 @ z2.T)
    adj2 = inner_product_decoder(z2, sigmoid=True, compute_in_bf16=False,
                                 out_dtype=jnp.float32,
                                 resident_budget_bytes=0)
    jax.block_until_ready(adj2)
    assert adj2.shape == (N2, N2)
    assert jnp.allclose(adj2, ref2, atol=1e-4, rtol=1e-4)

    print("KERNEL_OK")
</pallas_src>

<mosaic_0001>
module attributes {stable_mosaic.version = 11 : i64} {
  func.func @_ipd_kernel_resident(%arg0: i32, %arg1: i32, %arg2: memref<8x128xf32, #tpu.memory_space<vmem>>, %arg3: memref<128x128xf32, #tpu.memory_space<vmem>>, %arg4: memref<8x128xf32, #tpu.memory_space<vmem>>) attributes {dimension_semantics = [#tpu.dimension_semantics<parallel>, #tpu.dimension_semantics<parallel>], iteration_bounds = array<i64: 1, 1>, scalar_prefetch = 0 : i64, scratch_operands = 0 : i64, tpu.core_type = #tpu.core_type<tc>, window_params = [{transform_indices = @transform_0, window_bounds = array<i64: 8, 128>}, {pipeline_mode = #tpu.pipeline_mode<synchronous>, transform_indices = @transform_1, window_bounds = array<i64: 128, 128>}, {transform_indices = @transform_2, window_bounds = array<i64: 8, 128>}]} {
    %c128_i32 = arith.constant 128 : i32
    %0 = arith.muli %arg1, %c128_i32 : i32
    %1 = tpu.assume_multiple %0, 128 : i32
    %c0 = arith.constant 0 : index
    %2 = arith.index_cast %1 : i32 to index
    %3 = vector.load %arg3[%c0, %2] : memref<128x128xf32, #tpu.memory_space<vmem>>, vector<128x128xf32>
    %c0_0 = arith.constant 0 : index
    %c0_1 = arith.constant 0 : index
    %4 = vector.load %arg2[%c0_0, %c0_1] : memref<8x128xf32, #tpu.memory_space<vmem>>, vector<8x128xf32>
    %cst = arith.constant dense<0.000000e+00> : vector<8x128xf32>
    %5 = tpu.matmul %4, %3, %cst {dimension_numbers = #tpu.dot_dimension_numbers<[1], [0], [0], [1], [0, 0, 1, 1], [], []>} : vector<8x128xf32>, vector<128x128xf32>, vector<8x128xf32> -> vector<8x128xf32>
    %6 = arith.negf %5 : vector<8x128xf32>
    %7 = math.exp %6 : vector<8x128xf32>
    %cst_2 = arith.constant 1.000000e+00 : f32
    %8 = vector.broadcast %cst_2 : f32 to vector<8x128xf32>
    %9 = arith.addf %8, %7 : vector<8x128xf32>
    %10 = arith.divf %8, %9 : vector<8x128xf32>
    %c0_3 = arith.constant 0 : index
    %c0_4 = arith.constant 0 : index
    %11 = vector.load %arg4[%c0_3, %c0_4] : memref<8x128xf32, #tpu.memory_space<vmem>>, vector<8x128xf32>
    tpu.vector_store %arg4[%c0_3, %c0_4], %10 {strides = array<i32>} : memref<8x128xf32, #tpu.memory_space<vmem>>, vector<8x128xf32>,
    return
  }
  func.func @transform_0(%arg0: i32, %arg1: i32) -> (i32, i32) {
    %c0_i32 = arith.constant 0 : i32
    %c0_i32_0 = arith.constant 0 : i32
    return %arg0, %c0_i32 : i32, i32
  }
  func.func @transform_1(%arg0: i32, %arg1: i32) -> (i32, i32) {
    %c0_i32 = arith.constant 0 : i32
    %c0_i32_0 = arith.constant 0 : i32
    %c0_i32_1 = arith.constant 0 : i32
    return %c0_i32, %c0_i32_0 : i32, i32
  }
  func.func @transform_2(%arg0: i32, %arg1: i32) -> (i32, i32) {
    %c0_i32 = arith.constant 0 : i32
    return %arg0, %arg1 : i32, i32
  }
}

</mosaic_0001>

<bundles_post_ra>
// kernel: tpu_custom_call.1
= control target key start
LH: loop header
LB: loop body
LE: loop exit
PB: predicated region body
PF: predicated region fallthrough
CT: control target
= control target key end

     0   :  { %7 = vsyncpa [#allocation3], 0  ;;  %s380_s0 = inlined_call_operand.hbm [shape: f32[8,128], index: 0, kind: input, shape index: {}]   ;;  %s381_s1 = inlined_call_operand.hbm [shape: f32[128,128], index: 1, kind: input, shape index: {}]   ;;  %s382_s2 = inlined_call_operand.hbm [shape: f32[8,8], index: 2, kind: output, shape index: {}]  }
   0x1   :  { %8 = vsyncpa [#allocation6], 0 }
   0x2   :  { %9 = vsyncpa [#allocation4], 0  ;;  %s314_s9 = smov [#allocation2]   ;;  %s315_s11 = smov [#allocation5]  }
   0x3   :  { %s16_s10 = sshll.u32 %s314_s9, 4  ;;  %s25_s12 = sshll.u32 %s315_s11, 4  ;;  %s17_s10 = int_to_ptr.vmem [resolvable:$true] %s16_s10  ;;  %s337_s12 = int_to_ptr.vmem [resolvable:$true] %s25_s12 }
   0x4   :  { %s242_s15 = scalar_lea.hbm %s380_s0, 128 }
   0x5   :  { %p243_p0 = scmp.ne.s32.totalorder %s380_s0, %s242_s15  ;;  %p246_p1 = scmp.lt.u32.totalorder %s242_s15, %s380_s0 }
   0x7   :  { %p248_p2 = pnand %p246_p1, %p243_p0 }
   0x9   :  { %251 = shalt.err (!%p248_p2)
}
   0xa   :  { %s252_s20 = scalar_lea.vmem %s17_s10, 128  ;;  %p257_p4 = scmp.lt.s32.totalorder %s17_s10, %s17_s10 }
   0xb   :  { %p253_p3 = scmp.ne.s32.totalorder %s17_s10, %s252_s20  ;;  %p258_p5 = scmp.lt.s32.totalorder %s252_s20, %s252_s20 }
   0xd   :  { %p259_p6 = por %p258_p5, %p257_p4 }
   0xf   :  { %p260_p7 = pnand %p259_p6, %p253_p3 }
  0x11   :  { %263 = shalt.err (!%p260_p7)
}
  0x12   :  { %19 = dma.hbm_to_vmem [thread:$0]  %s380_s0, 128, %s17_s10, [#allocation3]  }
  0x13   :  { %s264_s25 = scalar_lea.hbm %s381_s1, 2048 }
  0x14   :  { %p265_p8 = scmp.ne.s32.totalorder %s381_s1, %s264_s25  ;;  %p268_p9 = scmp.lt.u32.totalorder %s264_s25, %s381_s1 }
  0x16   :  { %p270_p10 = pnand %p268_p9, %p265_p8 }
  0x18   :  { %273 = shalt.err (!%p270_p10)
}
  0x19   :  { %s274_s30 = scalar_lea.vmem %s337_s12, 2048  ;;  %p279_p12 = scmp.lt.s32.totalorder %s337_s12, %s337_s12 }
  0x1a   :  { %p275_p11 = scmp.ne.s32.totalorder %s337_s12, %s274_s30  ;;  %p280_p13 = scmp.lt.s32.totalorder %s274_s30, %s274_s30 }
  0x1c   :  { %p281_p0 = por %p280_p13, %p279_p12 }
  0x1e   :  { %p282_p1 = pnand %p281_p0, %p275_p11 }
  0x20   :  { %285 = shalt.err (!%p282_p1)
}
  0x21   :  { %s316_s0 = smov 128   ;;  %s317_s3 = smov 8  }
  0x22   :  { %31 = dma.hbm_to_vmem [thread:$0]  %s381_s1, 2048, %s337_s12, [#allocation6], %s316_s0, %s316_s0, %s317_s3  }
  0x23   :  { %308 = dma.done.wait [#allocation3], 128  }
  0x24   :  { %309 = vsyncadd [#allocation3], 4294967168 }
  0x25   :  { %310 = dma.done.wait [#allocation6], 2048  }
  0x26   :  { %311 = vsyncadd [#allocation6], 4294965248  ;;  %v318_v0 = vmov 0.0|0.0   ;;  %vm319_vm0 = vmmov 0   ;;  %v320_v1 = vmov 0.0   ;;  %v42_v2 = vld [vmem:[#allocation5] sm:$0xff] }
  0x27   :  { %206 = vmatprep.subr.bf16.mxu0 %v318_v0  ;;  %203 = vmatprep.mubr.msk.f32.mxu0 %vm319_vm0, %v320_v1  ;;  %v43_v3 = vld [vmem:[#allocation5 + $0x8] sm:$0xff]  ;;  %v44_v4 = vld [vmem:[#allocation5 + $0x10] sm:$0xff]  ;;  %v45_v6 = vld [vmem:[#allocation5 + $0x18] sm:$0xff]  ;;  %s321_s1 = smov [#allocation7]  }
  0x28   :  { %v207_v5 = vpack.c.bf16 %v43_v3, %v42_v2  ;;  %v210_v7 = vpack.c.bf16 %v45_v6, %v44_v4  ;;  %v46_v8 = vld [vmem:[#allocation5 + $0x20] sm:$0xff]  ;;  %v47_v9 = vld [vmem:[#allocation5 + $0x28] sm:$0xff]  ;;  %v48_v11 = vld [vmem:[#allocation5 + $0x30] sm:$0xff]  ;;  %s142_s6 = sshll.u32 %s321_s1, 4  ;;  %s143_s6 = int_to_ptr.vmem [resolvable:$true] %s142_s6 }
  0x29   :  { %v213_v10 = vpack.c.bf16 %v47_v9, %v46_v8  ;;  %v49_v12 = vld [vmem:[#allocation5 + $0x38] sm:$0xff]  ;;  %v50_v14 = vld [vmem:[#allocation5 + $0x40] sm:$0xff]  ;;  %v51_v15 = vld [vmem:[#allocation5 + $0x48] sm:$0xff]  ;;  %s286_s7 = scalar_lea.vmem %s143_s6, 128  ;;  %p291_p3 = scmp.lt.s32.totalorder %s143_s6, %s143_s6 }
  0x2a   :  { %208 = vmatpush3.bf16.msra.mxu0 %v207_v5  ;;  %v216_v13 = vpack.c.bf16 %v49_v12, %v48_v11  ;;  %v219_v16 = vpack.c.bf16 %v51_v15, %v50_v14  ;;  %v52_v17 = vld [vmem:[#allocation5 + $0x50] sm:$0xff]  ;;  %v53_v18 = vld [vmem:[#allocation5 + $0x58] sm:$0xff]  ;;  %v54_v20 = vld [vmem:[#allocation5 + $0x60] sm:$0xff]  ;;  %p287_p2 = scmp.ne.s32.totalorder %s143_s6, %s286_s7  ;;  %p292_p4 = scmp.lt.s32.totalorder %s286_s7, %s286_s7 }
  0x2b   :  { %209 = vmatprep.subr.bf16.mxu0 %v318_v0  ;;  %v222_v19 = vpack.c.bf16 %v53_v18, %v52_v17  ;;  %v55_v21 = vld [vmem:[#allocation5 + $0x68] sm:$0xff]  ;;  %v56_v23 = vld [vmem:[#allocation5 + $0x70] sm:$0xff]  ;;  %v57_v24 = vld [vmem:[#allocation5 + $0x78] sm:$0xff] }
  0x2c   :  { %v225_v22 = vpack.c.bf16 %v55_v21, %v54_v20  ;;  %v228_v25 = vpack.c.bf16 %v57_v24, %v56_v23  ;;  %v58_v26 = vld [vmem:[#allocation2] sm:$0xff]  ;;  %p293_p5 = por %p292_p4, %p291_p3 }
  0x2e   :  { %211 = vmatpush3.bf16.msra.mxu0 %v210_v7  ;;  %p294_p6 = pnand %p293_p5, %p287_p2 }
  0x2f   :  { %212 = vmatprep.subr.bf16.mxu0 %v318_v0 }
  0x32   :  { %214 = vmatpush3.bf16.msra.mxu0 %v213_v10 }
  0x33   :  { %215 = vmatprep.subr.bf16.mxu0 %v318_v0 }
  0x36   :  { %217 = vmatpush3.bf16.msra.mxu0 %v216_v13 }
  0x37   :  { %218 = vmatprep.subr.bf16.mxu0 %v318_v0 }
  0x3a   :  { %220 = vmatpush3.bf16.msra.mxu0 %v219_v16 }
  0x3b   :  { %221 = vmatprep.subr.bf16.mxu0 %v318_v0 }
  0x3e   :  { %223 = vmatpush3.bf16.msra.mxu0 %v222_v19 }
  0x3f   :  { %224 = vmatprep.subr.bf16.mxu0 %v318_v0 }
  0x42   :  { %226 = vmatpush3.bf16.msra.mxu0 %v225_v22 }
  0x43   :  { %227 = vmatprep.subr.bf16.mxu0 %v318_v0 }
  0x46   :  { %229 = vmatpush3.bf16.msra.mxu0 %v228_v25 }
  0x49   :  { %204 = vmatmul.mubr.f32.vlgmr.msra.gmra.mrb[0].mxu0 %v58_v26 }
 0x11c   :  { %v125_v27 = vpop.f32.mrb[0].mxu0 }
 0x11d   :  { %v153_v28 = vmul.f32 -1.442695, %v125_v27  ;;  %v205_v29 = vpop.f32.mrb[1].mxu0 }
 0x11f   :  { %238 = vpow2.f32 %v153_v28 }
 0x129   :  { %v239_v30 = vpop.eup %238 }
 0x12a   :  { %v132_v31 = vadd.f32 1.0, %v239_v30 }
 0x12c   :  { %240 = vrcp.f32 %v132_v31 }
 0x136   :  { %v241_v32 = vpop.eup %240 }
 0x137   :  { %135 = vst [vmem:[#allocation7] sm:$0xff] %v241_v32 }
 0x138   :  { %297 = shalt.err (!%p294_p6)
}
 0x139   :  { %s298_s10 = scalar_lea.hbm %s382_s2, 128 }
 0x13a   :  { %p299_p7 = scmp.ne.s32.totalorder %s382_s2, %s298_s10  ;;  %p302_p8 = scmp.lt.u32.totalorder %s298_s10, %s382_s2 }
 0x13c   :  { %p304_p9 = pnand %p302_p8, %p299_p7 }
 0x13e   :  { %307 = shalt.err (!%p304_p9)
}
 0x13f   :  { %145 = dma.vmem_to_hbm [thread:$0]  %s143_s6, 128, %s382_s2, [#allocation4]  }
 0x140   :  { %312 = dma.done.wait [#allocation4], 128  }
 0x141   :  { %313 = vsyncadd [#allocation4], 4294967168 }
 0x142   :  { %149 = vsyncpa [#allocation3], 1 }
 0x143   :  { %150 = vsyncpa [#allocation6], 1 }
 0x144   :  { %151 = vsyncpa [#allocation4], 1 }

</bundles_post_ra>
